<compile_context>
chip_gen: v7x
topology: tpu7x:2x2x1
jax: 0.10.0
libtpu: 0.0.40
codegen_flags: <defaults>
</compile_context>

<pallas_src>
import functools

import jax
import jax.numpy as jnp
from jax import lax
from jax.experimental import pallas as pl
from jax.experimental.pallas import tpu as pltpu


def _vmem_budget():
    """Returns (per-input-buffer byte budget, scoped vmem limit) for this chip."""
    try:
        cap = pltpu.get_tpu_info().vmem_capacity_bytes
    except Exception:
        cap = 64 * 1024 * 1024  # v7x-safe fallback (smallest VMEM of the three gens)
    per_buffer = min(cap // 6, 24 * 1024 * 1024)   # x tile is double-buffered
    vmem_limit = min((cap * 3) // 4, 96 * 1024 * 1024)
    return per_buffer, vmem_limit


def _num_tensorcores():
    """Best-effort TensorCores per device: 1 on v5e/v6e (and v2/v3), 2 on v7x/megacore."""
    try:
        kind = jax.devices()[0].device_kind.lower()
    except Exception:
        return 2
    single_core_tags = ("v5 lite", "v5lite", "v5e", "v6 lite", "v6lite", "v6e",
                        "v2", "v3")
    if any(tag in kind for tag in single_core_tags):
        return 1
    return 2  # unknown / v7x / megacore: keep >= 2 parallel blocks


def _context_kernel(x_ref, w_ref, o_ref, m_ref, l_ref, acc_ref, *, hw, t_hw):
    # x_ref:  (Bt, C, T)  native dtype      w_ref: (Bt, 1, C) compute dtype
    # o_ref:  (Bt, C, 1)                    scratch: m/l (Bt,1,1), acc (Bt,C,1) f32
    t = pl.program_id(1)
    nt = pl.num_programs(1)

    @pl.when(t == 0)
    def _init():
        m_ref[...] = jnp.full_like(m_ref, -jnp.inf)
        l_ref[...] = jnp.zeros_like(l_ref)
        acc_ref[...] = jnp.zeros_like(acc_ref)

    x = x_ref[...]                        # no full-tile upcast: bf16/f32 go straight to MXU
    if x.dtype != jnp.bfloat16 and x.dtype != jnp.float32:
        x = x.astype(jnp.float32)         # rare fallback for exotic input dtypes
    w = w_ref[...].astype(x.dtype)        # tiny (Bt, 1, C)

    # 1x1 conv -> one logit per spatial position.  (bias omitted: it cancels
    # in the softmax, so the forward output is unchanged.)
    logits = lax.dot_general(
        w, x,
        dimension_numbers=(((2,), (1,)), ((0,), (0,))),
        preferred_element_type=jnp.float32)            # (Bt, 1, T) f32

    def update(lg, xv):
        # Online softmax over the spatial axis + running weighted-feature sum.
        m_prev = m_ref[...]                                             # (Bt,1,1)
        m_new = jnp.maximum(m_prev, jnp.max(lg, axis=-1, keepdims=True))
        alpha = jnp.exp(m_prev - m_new)
        p = jnp.exp(lg - m_new)                                         # (Bt,1,T) f32
        l_ref[...] = alpha * l_ref[...] + jnp.sum(p, axis=-1, keepdims=True)
        # x stays on the LHS (streams as MXU activations, same structure as the
        # flash-attention 'bqd,bkd->bqk' contraction); only the tiny p operand
        # is cast down.  Result (Bt, C, 1) -> no transpose of anything large.
        ctx_part = lax.dot_general(
            xv, p.astype(xv.dtype),
            dimension_numbers=(((2,), (2,)), ((0,), (0,))),
            preferred_element_type=jnp.float32)                         # (Bt,C,1)
        acc_ref[...] = alpha * acc_ref[...] + ctx_part
        m_ref[...] = m_new

    if hw % t_hw != 0:
        # Ragged spatial extent: only the last tile carries padded lanes, so
        # only it pays for the iota + selects; interior tiles stay clean.
        @pl.when(t != nt - 1)
        def _steady():
            update(logits, x)

        @pl.when(t == nt - 1)
        def _tail():
            pos = t * t_hw + lax.broadcasted_iota(jnp.int32, (1, 1, t_hw), 2)
            valid = pos < hw
            # Mask BOTH operands: logits -> -inf AND x -> 0, so any NaN/Inf in
            # the out-of-bounds region can never reach the softmax or ctx dot.
            update(jnp.where(valid, logits, -jnp.inf),
                   jnp.where(valid, x, 0))
    else:
        update(logits, x)

    @pl.when(t == nt - 1)
    def _finalize():
        inv_l = pl.reciprocal(l_ref[...], approx=False)                 # (Bt,1,1)
        o_ref[...] = (acc_ref[...] * inv_l).astype(o_ref.dtype)


def context_modeling(images, weight, bias, *, block_b=None, block_hw=None):
    """images: [B, C, H, W]; weight: [1, C, 1, 1]; bias: [1] -> [B, C, 1, 1]."""
    B, C, H, W = images.shape
    HW = H * W
    x = images.reshape(B, C, HW)        # keep native dtype in HBM (halves DMA for bf16)
    itemsize = x.dtype.itemsize

    per_buffer, vmem_limit = _vmem_budget()
    ncores = _num_tensorcores()

    # VMEM footprint estimates use the padded tile layout: the sublane (C) dim
    # pads to 32/itemsize rows (8 f32 / 16 bf16 / 32 int8) and the lane (HW)
    # dim pads to a multiple of 128.
    sub = 32 // itemsize
    c_pad = -(-C // sub) * sub
    hw_pad = -(-HW // 128) * 128

    # Batch tile: largest divisor of B whose full-HW (padded) slab fits the
    # budget.  Keep >= ncores blocks on the parallel axis only on 2-TC chips
    # (v7x); on single-TC v5e/v6e splitting the batch just adds grid steps.
    if block_b is None:
        bt = 1
        for cand in range(1, B + 1):
            if B % cand != 0:
                continue
            if cand * c_pad * hw_pad * itemsize > per_buffer:
                continue
            if ncores > 1 and B >= ncores and B // cand < ncores:
                continue
            bt = cand
    else:
        bt = block_b
    assert B % bt == 0

    # Spatial tile: full HW if the (padded) slab fits, else the largest
    # multiple of 512 (burst-friendly strided DMA rows) that does, with a
    # 128-multiple fallback.  Single-pass HBM reads + pipelining either way.
    if block_hw is None:
        if bt * c_pad * hw_pad * itemsize <= per_buffer or HW <= 512:
            t_hw = HW
        else:
            max_lanes = per_buffer // (bt * c_pad * itemsize)
            if max_lanes >= 512:
                t_hw = (max_lanes // 512) * 512
            else:
                t_hw = max(128, (max_lanes // 128) * 128)
    else:
        t_hw = block_hw
    assert t_hw == HW or t_hw % 128 == 0
    n_hw = pl.cdiv(HW, t_hw)

    # Conv weight, tiled per batch row for the batched dot, in the MXU compute
    # dtype (bf16 images -> bf16 weight operand).  Bias is not used:
    # softmax(z + b) == softmax(z), so the module output is identical.
    op_dtype = jnp.bfloat16 if images.dtype == jnp.bfloat16 else jnp.float32
    w_tiled = jnp.broadcast_to(weight.reshape(1, 1, C), (bt, 1, C)).astype(op_dtype)
    del bias

    kernel = functools.partial(_context_kernel, hw=HW, t_hw=t_hw)

    # TODO(synk): for B == 1 on v7x, split the HW reduction across the two
    # TensorCores (partial (m, l, acc) per core + tiny combine), and consider
    # pl.Buffered(3) on the x BlockSpec if xprof shows inter-tile DMA bubbles.
    out = pl.pallas_call(
        kernel,
        out_shape=jax.ShapeDtypeStruct((B, C, 1), images.dtype),
        grid_spec=pltpu.PrefetchScalarGridSpec(
            num_scalar_prefetch=0,
            grid=(B // bt, n_hw),
            in_specs=[
                pl.BlockSpec((bt, C, t_hw), lambda bi, ti: (bi, 0, ti)),
                pl.BlockSpec((bt, 1, C), lambda bi, ti: (0, 0, 0)),
            ],
            out_specs=pl.BlockSpec((bt, C, 1), lambda bi, ti: (bi, 0, 0)),
            scratch_shapes=[
                pltpu.VMEM((bt, 1, 1), jnp.float32),   # running max
                pltpu.VMEM((bt, 1, 1), jnp.float32),   # running softmax denom
                pltpu.VMEM((bt, C, 1), jnp.float32),   # context accumulator
            ],
        ),
        compiler_params=pltpu.CompilerParams(
            dimension_semantics=("parallel", "arbitrary"),
            vmem_limit_bytes=vmem_limit,
        ),
    )(x, w_tiled)
    return out.reshape(B, C, 1, 1)


def _reference(images, weight, bias):
    B, C, H, W = images.shape
    HW = H * W
    imgs = images.astype(jnp.float32)
    logits = jnp.einsum("bchw,c->bhw", imgs, weight.reshape(C).astype(jnp.float32))
    logits = logits.reshape(B, HW) + bias.astype(jnp.float32)[0]
    prob = jax.nn.softmax(logits, axis=1)
    ctx = jnp.einsum("bcs,bs->bc", imgs.reshape(B, C, HW), prob)
    return ctx.reshape(B, C, 1, 1)


if __name__ == "__main__":
    key = jax.random.PRNGKey(0)
    k_img, k_w, k_b = jax.random.split(key, 3)

    B, C, H, W = 4, 4, 16, 16
    images = jax.random.normal(k_img, (B, C, H, W), dtype=jnp.float32)
    weight = jax.random.normal(k_w, (1, C, 1, 1), dtype=jnp.float32) * 0.1
    bias = jax.random.normal(k_b, (1,), dtype=jnp.float32) * 0.1

    # 1) f32, auto tiling (batch-tiled, single spatial tile, no masking path).
    out = jax.block_until_ready(context_modeling(images, weight, bias))
    ref = _reference(images, weight, bias)
    assert out.shape == (B, C, 1, 1)
    assert jnp.allclose(out, ref, atol=1e-5, rtol=1e-5), "f32 mismatch"

    # 2) Ragged spatial size + forced 128-wide spatial tiles: exercises the
    #    online-softmax reduction path and the pl.when-gated tail masking
    #    (HW = 225, tiles of 128 -> one clean tile + one masked tail tile).
    H2, W2 = 15, 15
    images2 = jax.random.normal(k_img, (B, C, H2, W2), dtype=jnp.float32)
    out2 = jax.block_until_ready(
        context_modeling(images2, weight, bias, block_hw=128))
    ref2 = _reference(images2, weight, bias)
    assert jnp.allclose(out2, ref2, atol=1e-5, rtol=1e-5), "tiled/masked mismatch"

    # 3) bf16 images stay bf16 in HBM and feed the MXU directly (f32 accumulate);
    #    only w and p are bf16-cast, softmax stats stay f32.
    images_bf16 = images.astype(jnp.bfloat16)
    out3 = jax.block_until_ready(context_modeling(images_bf16, weight, bias))
    ref3 = _reference(images_bf16, weight, bias)
    assert jnp.allclose(out3.astype(jnp.float32), ref3, atol=2e-2, rtol=2e-2), \
        "bf16 mismatch"

    print("KERNEL_OK")
</pallas_src>

<mosaic_0001>
module attributes {stable_mosaic.version = 11 : i64} {
  func.func @_context_kernel(%arg0: i32, %arg1: i32, %arg2: memref<2x4x256xf32, #tpu.memory_space<vmem>>, %arg3: memref<2x1x4xf32, #tpu.memory_space<vmem>>, %arg4: memref<2x4x1xf32, #tpu.memory_space<vmem>>, %arg5: memref<2x1x1xf32, #tpu.memory_space<vmem>>, %arg6: memref<2x1x1xf32, #tpu.memory_space<vmem>>, %arg7: memref<2x4x1xf32, #tpu.memory_space<vmem>>) attributes {dimension_semantics = [#tpu.dimension_semantics<parallel>, #tpu.dimension_semantics<arbitrary>], iteration_bounds = array<i64: 2, 1>, scalar_prefetch = 0 : i64, scratch_operands = 3 : i64, tpu.core_type = #tpu.core_type<tc>, window_params = [{transform_indices = @transform_0, window_bounds = array<i64: 2, 4, 256>}, {pipeline_mode = #tpu.pipeline_mode<synchronous>, transform_indices = @transform_1, window_bounds = array<i64: 2, 1, 4>}, {transform_indices = @transform_2, window_bounds = array<i64: 2, 4, 1>}]} {
    %c0_i32 = arith.constant 0 : i32
    %0 = arith.cmpi eq, %arg1, %c0_i32 : i32
    %1 = arith.extui %0 : i1 to i32
    %c0_i32_0 = arith.constant 0 : i32
    %2 = arith.cmpi ne, %1, %c0_i32_0 : i32
    scf.if %2 {
      %cst_29 = arith.constant 0xFF800000 : f32
      %31 = vector.broadcast %cst_29 : f32 to vector<2x1x1xf32>
      %c0_30 = arith.constant 0 : index
      %c0_31 = arith.constant 0 : index
      %c0_32 = arith.constant 0 : index
      %32 = vector.load %arg5[%c0_30, %c0_31, %c0_32] : memref<2x1x1xf32, #tpu.memory_space<vmem>>, vector<2x1x1xf32>
      tpu.vector_store %arg5[%c0_30, %c0_31, %c0_32], %31 {strides = array<i32>} : memref<2x1x1xf32, #tpu.memory_space<vmem>>, vector<2x1x1xf32>,
      %cst_33 = arith.constant 0.000000e+00 : f32
      %33 = vector.broadcast %cst_33 : f32 to vector<2x1x1xf32>
      %c0_34 = arith.constant 0 : index
      %c0_35 = arith.constant 0 : index
      %c0_36 = arith.constant 0 : index
      %34 = vector.load %arg6[%c0_34, %c0_35, %c0_36] : memref<2x1x1xf32, #tpu.memory_space<vmem>>, vector<2x1x1xf32>
      tpu.vector_store %arg6[%c0_34, %c0_35, %c0_36], %33 {strides = array<i32>} : memref<2x1x1xf32, #tpu.memory_space<vmem>>, vector<2x1x1xf32>,
      %cst_37 = arith.constant 0.000000e+00 : f32
      %35 = vector.broadcast %cst_37 : f32 to vector<2x4x1xf32>
      %c0_38 = arith.constant 0 : index
      %c0_39 = arith.constant 0 : index
      %c0_40 = arith.constant 0 : index
      %36 = vector.load %arg7[%c0_38, %c0_39, %c0_40] : memref<2x4x1xf32, #tpu.memory_space<vmem>>, vector<2x4x1xf32>
      tpu.vector_store %arg7[%c0_38, %c0_39, %c0_40], %35 {strides = array<i32>} : memref<2x4x1xf32, #tpu.memory_space<vmem>>, vector<2x4x1xf32>,
    } else {
    }
    %c0 = arith.constant 0 : index
    %c0_1 = arith.constant 0 : index
    %c0_2 = arith.constant 0 : index
    %3 = vector.load %arg2[%c0, %c0_1, %c0_2] : memref<2x4x256xf32, #tpu.memory_space<vmem>>, vector<2x4x256xf32>
    %c0_3 = arith.constant 0 : index
    %c0_4 = arith.constant 0 : index
    %c0_5 = arith.constant 0 : index
    %4 = vector.load %arg3[%c0_3, %c0_4, %c0_5] : memref<2x1x4xf32, #tpu.memory_space<vmem>>, vector<2x1x4xf32>
    %cst = arith.constant dense<0.000000e+00> : vector<2x1x256xf32>
    %5 = tpu.matmul %4, %3, %cst {dimension_numbers = #tpu.dot_dimension_numbers<[2], [1], [1], [2], [0, 0, 0, 1, 1, 2], [0], [0]>} : vector<2x1x4xf32>, vector<2x4x256xf32>, vector<2x1x256xf32> -> vector<2x1x256xf32>
    %c0_6 = arith.constant 0 : index
    %c0_7 = arith.constant 0 : index
    %c0_8 = arith.constant 0 : index
    %6 = vector.load %arg5[%c0_6, %c0_7, %c0_8] : memref<2x1x1xf32, #tpu.memory_space<vmem>>, vector<2x1x1xf32>
    %cst_9 = arith.constant dense<0xFF800000> : vector<2x1xf32>
    %7 = vector.multi_reduction <maximumf>, %5, %cst_9 [2] : vector<2x1x256xf32> to vector<2x1xf32>
    %8 = vector.shape_cast %7 : vector<2x1xf32> to vector<2x1x1xf32>
    %9 = arith.maximumf %6, %8 : vector<2x1x1xf32>
    %10 = arith.subf %6, %9 : vector<2x1x1xf32>
    %11 = math.exp %10 : vector<2x1x1xf32>
    %12 = vector.broadcast %9 : vector<2x1x1xf32> to vector<2x1x256xf32>
    %13 = arith.subf %5, %12 : vector<2x1x256xf32>
    %14 = math.exp %13 : vector<2x1x256xf32>
    %c0_10 = arith.constant 0 : index
    %c0_11 = arith.constant 0 : index
    %c0_12 = arith.constant 0 : index
    %15 = vector.load %arg6[%c0_10, %c0_11, %c0_12] : memref<2x1x1xf32, #tpu.memory_space<vmem>>, vector<2x1x1xf32>
    %16 = arith.mulf %11, %15 : vector<2x1x1xf32>
    %cst_13 = arith.constant dense<0.000000e+00> : vector<2x1xf32>
    %17 = vector.multi_reduction <add>, %14, %cst_13 [2] : vector<2x1x256xf32> to vector<2x1xf32>
    %18 = vector.shape_cast %17 : vector<2x1xf32> to vector<2x1x1xf32>
    %19 = arith.addf %16, %18 : vector<2x1x1xf32>
    %c0_14 = arith.constant 0 : index
    %c0_15 = arith.constant 0 : index
    %c0_16 = arith.constant 0 : index
    %20 = vector.load %arg6[%c0_14, %c0_15, %c0_16] : memref<2x1x1xf32, #tpu.memory_space<vmem>>, vector<2x1x1xf32>
    tpu.vector_store %arg6[%c0_14, %c0_15, %c0_16], %19 {strides = array<i32>} : memref<2x1x1xf32, #tpu.memory_space<vmem>>, vector<2x1x1xf32>,
    %cst_17 = arith.constant dense<0.000000e+00> : vector<2x4x1xf32>
    %21 = tpu.matmul %3, %14, %cst_17 {dimension_numbers = #tpu.dot_dimension_numbers<[2], [2], [1], [1], [0, 0, 0, 1, 1, 1], [0], [0]>} : vector<2x4x256xf32>, vector<2x1x256xf32>, vector<2x4x1xf32> -> vector<2x4x1xf32>
    %c0_18 = arith.constant 0 : index
    %c0_19 = arith.constant 0 : index
    %c0_20 = arith.constant 0 : index
    %22 = vector.load %arg7[%c0_18, %c0_19, %c0_20] : memref<2x4x1xf32, #tpu.memory_space<vmem>>, vector<2x4x1xf32>
    %23 = vector.broadcast %11 : vector<2x1x1xf32> to vector<2x4x1xf32>
    %24 = arith.mulf %23, %22 : vector<2x4x1xf32>
    %25 = arith.addf %24, %21 : vector<2x4x1xf32>
    %c0_21 = arith.constant 0 : index
    %c0_22 = arith.constant 0 : index
    %c0_23 = arith.constant 0 : index
    %26 = vector.load %arg7[%c0_21, %c0_22, %c0_23] : memref<2x4x1xf32, #tpu.memory_space<vmem>>, vector<2x4x1xf32>
    tpu.vector_store %arg7[%c0_21, %c0_22, %c0_23], %25 {strides = array<i32>} : memref<2x4x1xf32, #tpu.memory_space<vmem>>, vector<2x4x1xf32>,
    %c0_24 = arith.constant 0 : index
    %c0_25 = arith.constant 0 : index
    %c0_26 = arith.constant 0 : index
    %27 = vector.load %arg5[%c0_24, %c0_25, %c0_26] : memref<2x1x1xf32, #tpu.memory_space<vmem>>, vector<2x1x1xf32>
    tpu.vector_store %arg5[%c0_24, %c0_25, %c0_26], %9 {strides = array<i32>} : memref<2x1x1xf32, #tpu.memory_space<vmem>>, vector<2x1x1xf32>,
    %c0_i32_27 = arith.constant 0 : i32
    %28 = arith.cmpi eq, %arg1, %c0_i32_27 : i32
    %29 = arith.extui %28 : i1 to i32
    %c0_i32_28 = arith.constant 0 : i32
    %30 = arith.cmpi ne, %29, %c0_i32_28 : i32
    scf.if %30 {
      %c0_29 = arith.constant 0 : index
      %c0_30 = arith.constant 0 : index
      %c0_31 = arith.constant 0 : index
      %31 = vector.load %arg6[%c0_29, %c0_30, %c0_31] : memref<2x1x1xf32, #tpu.memory_space<vmem>>, vector<2x1x1xf32>
      %32 = tpu.reciprocal %31 : vector<2x1x1xf32> -> vector<2x1x1xf32>
      %c0_32 = arith.constant 0 : index
      %c0_33 = arith.constant 0 : index
      %c0_34 = arith.constant 0 : index
      %33 = vector.load %arg7[%c0_32, %c0_33, %c0_34] : memref<2x4x1xf32, #tpu.memory_space<vmem>>, vector<2x4x1xf32>
      %34 = vector.broadcast %32 : vector<2x1x1xf32> to vector<2x4x1xf32>
      %35 = arith.mulf %33, %34 : vector<2x4x1xf32>
      %c0_35 = arith.constant 0 : index
      %c0_36 = arith.constant 0 : index
      %c0_37 = arith.constant 0 : index
      %36 = vector.load %arg4[%c0_35, %c0_36, %c0_37] : memref<2x4x1xf32, #tpu.memory_space<vmem>>, vector<2x4x1xf32>
      tpu.vector_store %arg4[%c0_35, %c0_36, %c0_37], %35 {strides = array<i32>} : memref<2x4x1xf32, #tpu.memory_space<vmem>>, vector<2x4x1xf32>,
    } else {
    }
    return
  }
  func.func @transform_0(%arg0: i32, %arg1: i32) -> (i32, i32, i32) {
    %c0_i32 = arith.constant 0 : i32
    %c0_i32_0 = arith.constant 0 : i32
    return %arg0, %c0_i32, %arg1 : i32, i32, i32
  }
  func.func @transform_1(%arg0: i32, %arg1: i32) -> (i32, i32, i32) {
    %c0_i32 = arith.constant 0 : i32
    %c0_i32_0 = arith.constant 0 : i32
    %c0_i32_1 = arith.constant 0 : i32
    %c0_i32_2 = arith.constant 0 : i32
    return %c0_i32, %c0_i32_0, %c0_i32_1 : i32, i32, i32
  }
  func.func @transform_2(%arg0: i32, %arg1: i32) -> (i32, i32, i32) {
    %c0_i32 = arith.constant 0 : i32
    %c0_i32_0 = arith.constant 0 : i32
    %c0_i32_1 = arith.constant 0 : i32
    return %arg0, %c0_i32, %c0_i32_0 : i32, i32, i32
  }
}

</mosaic_0001>

<bundles_post_ra>
// kernel: tpu_custom_call.1
= control target key start
LH: loop header
LB: loop body
LE: loop exit
PB: predicated region body
PF: predicated region fallthrough
CT: control target
= control target key end

     0   :  { %7 = vsyncpa [#allocation6], 0  ;;  %s989_s0 = inlined_call_operand.hbm [shape: f32[4,4,256], index: 0, kind: input, shape index: {}]   ;;  %s990_s1 = inlined_call_operand.vmem [shape: f32[2,1,4], index: 1, kind: input, shape index: {}]   ;;  %s991_s2 = inlined_call_operand.vmem [shape: f32[4,4,1], index: 2, kind: output, shape index: {}]  }
   0x1   :  { %9 = vsyncpa [#allocation6 + $0x1], 0  ;;  %s806_s9 = smov 0   ;;  %s808_s10 = smov 0  }
   0x2   :  { %s810_s11 = smov 0   ;;  %s812_s12 = smov 0  }
   0x3   :  { %s814_s13 = smov 0   ;;  %s816_s14 = smov 0  }
   0x4 LB: > { %s601_s15 = sadd.s32 4294967295, %s783_s14   ;;  %s27_s16 = sadd.s32 1, %s779_s13  ;;  %s783_s14 = sphi %s816_s14, %s15_s14   ;;  %s779_s13 = sphi %s814_s13, %s999_s13   ;;  %s775_s12 = sphi %s812_s12, %s998_s12   ;;  %s771_s11 = sphi %s810_s11, %s997_s11   ;;  %s767_s10 = sphi %s808_s10, %s996_s10   ;;  %s763_s9 = sphi %s806_s9, %s995_s9  }
   0x5   : > { %p29_p0 = scmp.ge.s32.totalorder %s27_s16, 2  ;;  %s36_s17 = sadd.s32 1, %s771_s11 }
   0x6   : > { %p43_p1 = scmp.ne.s32.totalorder %s771_s11, %s767_s10  ;;  %p44_p2 = scmp.eq.s32.totalorder %s783_s14, 0 }
   0x7   : > { %s1001_s16 = smov (%p29_p0, %s27_s16), 0  ;;  %p49_p4 = scmp.ne.s32.totalorder %s767_s10, %s763_s9 }
   0x8   : > { %p842_p3 = por %p44_p2, %p43_p1  ;;  %s31_s19 = ssub.s32 %s779_s13, %s1001_s16 }
   0x9   : > { %p50_p5 = scmp.eq.s32.totalorder %s601_s15, 0  ;;  %p34_p6 = scmp.eq.s32.totalorder %s31_s19, 0 }
   0xa   : > { %p629_p8 = scmp.lt.s32.totalorder %s783_s14, 2  ;;  %s123_s22 = sand.u32 1, %s771_s11  }
   0xb   : > { %p849_p7 = por %p50_p5, %p49_p4  ;;  %s622_s23 = sshll.u32 %s779_s13, 8 }
   0xc   : > { %s855_s21 = scalar_select %p34_p6, %s771_s11, %s36_s17  }
   0xd   : > { %s605_s24 = sshll.u32 %s123_s22, 4  ;;  %s862_s27 = scalar_lea.hbm %s989_s0, %s622_s23 }
   0xe   : > { %s127_s28 = scalar_lea.vmem [#allocation5], %s605_s24  ;;  %p866_p9 = pnand %p629_p8, %p842_p3 }
   0xf   : > { %s137_s29 = sshll.u32 %s127_s28, 4  ;;  %s872_s3 = scalar_lea.sflag [#allocation6], %s123_s22  ;;  %s870_s29 = int_to_ptr.vmem [resolvable:$true] %s137_s29 }
  0x10   : > { %s703_s4 = scalar_lea.hbm %s862_s27, 256  ;;  %p705_p11 = pneg %p866_p9 }
  0x11   : > { %p704_p10 = scmp.ne.s32.totalorder %s862_s27, %s703_s4  ;;  %s708_s7 = scalar_lea.hbm %s989_s0, 512 }
  0x12   : > { %p709_p0 = scmp.lt.u32.totalorder %s862_s27, %s989_s0  ;;  %p710_p1 = scmp.lt.u32.totalorder %s708_s7, %s703_s4 }
  0x13   : > { %p706_p12 = pnand %p705_p11, %p704_p10  ;;  %p712_p3 = scmp.lt.u32.totalorder %s703_s4, %s862_s27 }
  0x14   : > { %p711_p2 = por %p710_p1, %p709_p0 }
  0x15   : > { %p707_p13 = pneg %p706_p12 }
  0x16   : > { %p713_p4 = por %p712_p3, %p711_p2 }
  0x18   : > { %p714_p5 = pnand %p713_p4, %p707_p13 }
  0x1a   : > { %717 = shalt.err (!%p714_p5)
}
  0x1b   : > { %s718_s15 = scalar_lea.vmem %s870_s29, 256  ;;  %s785_s17 = smov [#allocation5]  }
  0x1c   : > { %p719_p6 = scmp.ne.s32.totalorder %s870_s29, %s718_s15  ;;  %s723_s18 = sshll.u32 %s785_s17, 4  ;;  %s724_s18 = int_to_ptr.vmem [resolvable:$false] %s723_s18 }
  0x1d   : > { %s725_s19 = scalar_lea.vmem %s724_s18, 512  ;;  %p726_p12 = scmp.lt.s32.totalorder %s870_s29, %s724_s18 }
  0x1e   : > { %p721_p8 = pnand %p719_p6, %p705_p11  ;;  %p727_p0 = scmp.lt.s32.totalorder %s725_s19, %s718_s15 }
  0x20   : > { %p722_p10 = pneg %p721_p8  ;;  %p728_p1 = por %p727_p0, %p726_p12 }
  0x22   : > { %p729_p2 = pnand %p728_p1, %p722_p10 }
  0x24   : > { %732 = shalt.err (!%p729_p2)
}
  0x25   : > { %s786_s22 = smov 128   ;;  %s787_s23 = smov 8  }
  0x26   : > { %628 = dma.hbm_to_vmem [thread:$0]  (!%p866_p9), %s862_s27, 256, %s870_s29, %s872_s3, %s786_s22, %s786_s22, %s787_s23  }
  0x27   : > { %p609_p11 = scmp.ge.s32.totalorder %s783_s14, 1  ;;  %p145_p13 = scmp.lt.s32.totalorder %s783_s14, 3 }
  0x29   : > { %p146_p3 = pnand %p609_p11, %p145_p13 }
  0x2a   : > { %s151_s24 = sand.u32 (!%p146_p3), 1, %s767_s10  }
  0x2b   : > { %149 = sbr.rel (%p146_p3) target bundleno = 737 (0x2e1), region = 28  ;;  %s610_s25 = sshll.u32 (!%p146_p3), %s151_s24, 4 }
  0x2c   : > { %s152_s26 = scalar_lea.sflag (!%p146_p3), [#allocation6], %s151_s24  ;;  %s155_s28 = scalar_lea.vmem (!%p146_p3), [#allocation5], %s610_s25 }
  0x32   : > { %758 = dma.done.wait (%p849_p7), %s152_s26, 256  }
  0x33   : > { %760 = vsyncadd (%p849_p7), %s152_s26, 4294967040  ;;  %v788_v0 = vmov 0.0   ;;  %v907_v1 = vld [vmem:[%s155_s28] sm:$0xff]  ;;  %vm206_vm0 = vcmask 1043456   ;;  %v909_v2 = vld [vmem:[%s155_s28 + $0x8] sm:$0xff]  ;;  %vm202_vm1 = vcmask 31744   ;;  %v388_v27 = vlaneseq }
  0x34   : > { %275 = vmatprep.mubr.f32.mxu0 %v788_v0  ;;  %355 = vmatprep.mubr.f32.mxu1 %v788_v0  ;;  %v201_v3 = vcombine.high %v907_v1, %v907_v1  ;;  %v283_v4 = vcombine.high %v909_v2, %v909_v2  ;;  %v198_v5 = vld [vmem:[%s990_s1] sm:$0x1]  ;;  %v199_v6 = vld [vmem:[%s990_s1 + $0x1] sm:$0x1]  ;;  %vm188_vm2 = vcmask 0   ;;  %v789_v7 = vmov -inf  }
  0x35   : > { %189 = vst.msk [vmem:[#allocation2] sm:$0x1] %vm188_vm2, %v789_v7  ;;  %190 = vst.msk [vmem:[#allocation2 + $0x1] sm:$0x1] %vm188_vm2, %v789_v7  ;;  %vm364_vm3 = vcmask 1040384   ;;  %v790_v18 = vmov 0  }
  0x36   : > { %613 = vmatprep.subr.msk.mxu0 %vm206_vm0, %v201_v3  ;;  %616 = vmatprep.subr.msk.mxu1 %vm206_vm0, %v283_v4  ;;  %191 = vst.msk [vmem:[#allocation3] sm:$0x1] %vm188_vm2, %v788_v0  ;;  %192 = vst.msk [vmem:[#allocation3 + $0x1] sm:$0x1] %vm188_vm2, %v788_v0  ;;  %vm193_vm4 = vcmask 3072   ;;  %v389_v28 = vshrl.u32 %v388_v27, 7 }
  0x37   : > { %614 = vmatpush1.msk.msra.mxu0 %vm206_vm0, %v907_v1  ;;  %617 = vmatpush1.msk.msra.mxu1 %vm206_vm0, %v909_v2  ;;  %194 = vst.msk [vmem:[#allocation4] sm:$0xf] %vm193_vm4, %v788_v0  ;;  %195 = vst.msk [vmem:[#allocation4 + $0x4] sm:$0xf] %vm193_vm4, %v788_v0  ;;  %s611_s3 = sshll.u32 %s775_s12, 1 }
  0x38   : > { %615 = vmatmul.mubr.msk.f32.vlgmr.msra.gmra.mrb[0].mxu0 %vm202_vm1, %v198_v5  ;;  %618 = vmatmul.mubr.msk.f32.vlgmr.msra.gmra.mrb[0].mxu1 %vm202_vm1, %v199_v6  ;;  %v939_v29 = vsub.s32 0, %v389_v28  ;;  %p179_p7 = scmp.lt.s32.totalorder %s611_s3, 3 }
  0x39   : > { %683 = vset.pattern.permute.xlu1 %v790_v18  ;;  %684 = vset.pattern.permute.xlu0 %v790_v18 }
  0x3a   : > { %s1003_s3 = smov (!%p179_p7, %s611_s3), 3 }
  0x3b   : > { %s612_s4 = sshll.u32 %s1003_s3, 2 }
  0x3c   : > { %v362_v19 = vld [vmem:[#allocation2] sm:$0x1]  ;;  %v363_v22 = vld [vmem:[#allocation2 + $0x1] sm:$0x1]  ;;  %s182_s6 = scalar_lea.vmem %s991_s2, %s612_s4 }
 0x10b   : > { %v277_v8 = vpop.f32.mrb[0].mxu0  ;;  %v357_v9 = vpop.f32.mrb[0].mxu1 }
 0x10c   : > { %v279_v10 = vpop.f32.mrb[1].mxu0  ;;  %v370_v11 = vsel %vm364_vm3, %v357_v9, -inf  ;;  %v359_v12 = vpop.f32.mrb[1].mxu1  ;;  %v365_v13 = vsel %vm364_vm3, %v277_v8, -inf }
 0x10d   : > { %v366_v14 = vsel %vm364_vm3, %v279_v10, -inf  ;;  %v371_v15 = vsel %vm364_vm3, %v359_v12, -inf }
 0x10e   : > { %v367_v16 = vmax.f32 %v365_v13, %v366_v14  ;;  %v372_v17 = vmax.f32 %v370_v11, %v371_v15 }
 0x110   : > { %368 = vmax.xlane.f32.xlu0 %v367_v16  ;;  %v474_v16 = vld [vmem:[#allocation4] sm:$0xf] }
 0x114   : > { %373 = vmax.xlane.f32.xlu0 %v372_v17 }
 0x19d   : > { %v369_v20 = vpop.xlane.xlu0 %368 }
 0x19e   : > { %v375_v21 = vmax.f32 %v362_v19, %v369_v20 }
 0x1a0   : > { %v377_v23 = vsub.f32 %v362_v19, %v375_v21  ;;  %495 = vst.msk [vmem:[#allocation2] sm:$0x1] %vm188_vm2, %v375_v21  ;;  %385 = vperm.xlu1 %683, %v375_v21   ;;  %v475_v21 = vld [vmem:[#allocation4 + $0x4] sm:$0xf] }
 0x1a1   : > { %v374_v24 = vpop.xlane.xlu0 %373 }
 0x1a2   : > { %v376_v25 = vmax.f32 %v363_v22, %v374_v24  ;;  %v379_v5 = vmul.f32 1.442695, %v377_v23 }
 0x1a4   : > { %v378_v26 = vsub.f32 %v363_v22, %v376_v25  ;;  %496 = vst.msk [vmem:[#allocation2 + $0x1] sm:$0x1] %vm188_vm2, %v376_v25  ;;  %394 = vperm.xlu1 %683, %v376_v25  }
 0x1a6   : > { %v381_v6 = vmul.f32 1.442695, %v378_v26 }
 0x21f   : > { %v386_v30 = vpop.permute.xlu1 %385 }
 0x220   : > { %v391_v31 = vrot.slane %v386_v30, %v939_v29 }
 0x222   : > { %v401_v32 = vsub.f32 %v277_v8, %v391_v31  ;;  %v402_v33 = vsub.f32 %v279_v10, %v391_v31  ;;  %v413_v8 = vld [vmem:[#allocation3] sm:$0x1] }
 0x223   : > { %v395_v34 = vpop.permute.xlu1 %394 }
 0x224   : > { %v405_v35 = vmul.f32 1.442695, %v401_v32  ;;  %v407_v36 = vmul.f32 1.442695, %v402_v33  ;;  %v400_v37 = vrot.slane %v395_v34, %v939_v29 }
 0x226   : > { %687 = vpow2.f32 %v405_v35  ;;  %v403_v38 = vsub.f32 %v357_v9, %v400_v37  ;;  %v404_v39 = vsub.f32 %v359_v12, %v400_v37 }
 0x227   : > { %689 = vpow2.f32 %v407_v36 }
 0x228   : > { %v409_v40 = vmul.f32 1.442695, %v403_v38  ;;  %v411_v41 = vmul.f32 1.442695, %v404_v39 }
 0x22a   : > { %691 = vpow2.f32 %v409_v40 }
 0x22b   : > { %693 = vpow2.f32 %v411_v41 }
 0x22c   : > { %695 = vpow2.f32 %v379_v5 }
 0x22d   : > { %697 = vpow2.f32 %v381_v6 }
 0x230   : > { %v688_v42 = vpop.eup %687 }
 0x231   : > { %v690_v43 = vpop.eup %689  ;;  %v417_v44 = vsel %vm364_vm3, %v688_v42, 0.0  ;;  %v435_v45 = vrot.slane %v688_v42, %v939_v29 }
 0x232   : > { %v418_v46 = vsel %vm364_vm3, %v690_v43, 0.0  ;;  %v439_v47 = vrot.slane %v690_v43, %v939_v29 }
 0x233   : > { %v419_v48 = vadd.f32 %v418_v46, %v417_v44 }
 0x234   : > { %v692_v49 = vpop.eup %691  ;;  %v442_v50 = vcombine.low %v435_v45, %v439_v47 }
 0x235   : > { %v694_v51 = vpop.eup %693  ;;  %420 = vadd.xlane.f32.xlu0 %v419_v48  ;;  %v422_v52 = vsel %vm364_vm3, %v692_v49, 0.0  ;;  %v456_v53 = vrot.slane %v692_v49, %v939_v29 }
 0x236   : > { %v423_v54 = vsel %vm364_vm3, %v694_v51, 0.0  ;;  %v444_v55 = vmul.f32 %v442_v50, %v907_v1  ;;  %v460_v56 = vrot.slane %v694_v51, %v939_v29  ;;  %v696_v7 = vpop.eup %695 }
 0x237   : > { %v424_v57 = vadd.f32 %v423_v54, %v422_v52  ;;  %v415_v9 = vmul.f32 %v696_v7, %v413_v8  ;;  %v698_v10 = vpop.eup %697  ;;  %v481_v14 = vrot.slane %v696_v7, %v939_v29 }
 0x238   : > { %v446_v58 = vcombine.high %v444_v55, %v444_v55  ;;  %v463_v59 = vcombine.low %v456_v53, %v460_v56  ;;  %v448_v60 = vsel %vm206_vm0, %v444_v55, 0.0  ;;  %v485_v19 = vrot.slane %v698_v10, %v939_v29 }
 0x239   : > { %425 = vadd.xlane.f32.xlu1 %v424_v57  ;;  %v488_v18 = vmul.f32 %v481_v14, %v474_v16 }
 0x23a   : > { %v449_v61 = vsel %vm206_vm0, %v446_v58, 0.0  ;;  %v465_v62 = vmul.f32 %v463_v59, %v909_v2  ;;  %v414_v2 = vld [vmem:[#allocation3 + $0x1] sm:$0x1]  ;;  %v489_v24 = vmul.f32 %v485_v19, %v475_v21 }
 0x23b   : > { %v450_v63 = vadd.f32 %v449_v61, %v448_v60  ;;  %v416_v13 = vmul.f32 %v698_v10, %v414_v2 }
 0x23c   : > { %v467_v0 = vcombine.high %v465_v62, %v465_v62  ;;  %v469_v3 = vsel %vm206_vm0, %v465_v62, 0.0 }
 0x23d   : > { %451 = vadd.xlane.f32.xlu0 %v450_v63 }
 0x23e   : > { %v470_v4 = vsel %vm206_vm0, %v467_v0, 0.0 }
 0x23f   : > { %v471_v1 = vadd.f32 %v470_v4, %v469_v3 }
 0x241   : > { %472 = vadd.xlane.f32.xlu0 %v471_v1 }
 0x2c2   : > { %v421_v11 = vpop.xlane.xlu0 %420 }
 0x2c3   : > { %v427_v12 = vadd.f32 %v421_v11, %v415_v9 }
 0x2c5   : > { %430 = vst.msk [vmem:[#allocation3] sm:$0x1] %vm188_vm2, %v427_v12 }
 0x2c6   : > { %v426_v15 = vpop.xlane.xlu1 %425 }
 0x2c7   : > { %v428_v17 = vadd.f32 %v426_v15, %v416_v13 }
 0x2c9   : > { %431 = vst.msk [vmem:[#allocation3 + $0x1] sm:$0x1] %vm188_vm2, %v428_v17 }
 0x2ca   : > { %v452_v20 = vpop.xlane.xlu0 %451 }
 0x2cb   : > { %v490_v22 = vadd.f32 %v488_v18, %v452_v20 }
 0x2cc   : > { %v500_v23 = vld [vmem:[#allocation3] sm:$0x1] }
 0x2cd   : > { %699 = vrcp.f32 %v500_v23  ;;  %493 = vst.msk [vmem:[#allocation4] sm:$0xf] %vm193_vm4, %v490_v22 }
 0x2ce   : > { %v473_v25 = vpop.xlane.xlu0 %472 }
 0x2cf   : > { %v491_v26 = vadd.f32 %v489_v24, %v473_v25 }
 0x2d0   : > { %v501_v27 = vld [vmem:[#allocation3 + $0x1] sm:$0x1] }
 0x2d1   : > { %701 = vrcp.f32 %v501_v27  ;;  %494 = vst.msk [vmem:[#allocation4 + $0x4] sm:$0xf] %vm193_vm4, %v491_v26 }
 0x2d4   : > { %v504_v31 = vld [vmem:[#allocation4] sm:$0xf] }
 0x2d7   : > { %v700_v28 = vpop.eup %699 }
 0x2d8   : > { %v511_v30 = vrot.slane %v700_v28, %v939_v29  ;;  %v505_v35 = vld [vmem:[#allocation4 + $0x4] sm:$0xf] }
 0x2da   : > { %v518_v32 = vmul.f32 %v511_v30, %v504_v31 }
 0x2db   : > { %v702_v33 = vpop.eup %701 }
 0x2dc   : > { %520 = vst.msk [vmem:[%s182_s6] sm:$0xf] %vm193_vm4, %v518_v32  ;;  %v515_v34 = vrot.slane %v702_v33, %v939_v29 }
 0x2de   : > { %v519_v36 = vmul.f32 %v515_v34, %v505_v35 }
 0x2e0   : > { %521 = vst.msk [vmem:[%s182_s6 + $0x4] sm:$0xf] %vm193_vm4, %v519_v36 }
 0x2e1 PF: > { %s15_s14 = sadd.s32 1, %s783_s14   ;;  %s995_s9 = smov %s767_s10 }
 0x2e2   : > { %p12_p9 = scmp.ge.s32.totalorder %s15_s14, 4   ;;  %s996_s10 = smov %s771_s11 }
 0x2e3   : > { %s997_s11 = smov %s855_s21  ;;  %s998_s12 = smov %s779_s13 }
 0x2e4   : > { %s999_s13 = smov %s1001_s16  ;;  %14 = sbr.rel (!%p12_p9) target bundleno = 4 (0x4), region = 76 }
 0x2eb   :  { %544 = vsyncpa [#allocation6], 1 }
 0x2ec   :  { %546 = vsyncpa [#allocation6 + $0x1], 1 }

</bundles_post_ra>
